<compile_context>
chip_gen: v5e
topology: v5e:2x2
jax: 0.10.0
libtpu: 0.0.40
codegen_flags: <defaults>
</compile_context>

<pallas_src>
import jax
import jax.numpy as jnp
from jax import lax
from jax.experimental import pallas as pl
from jax.experimental.pallas import tpu as pltpu

_EPS = 1e-12


def _round_up(x, m):
    return ((x + m - 1) // m) * m


def rownorm_kernel(scale_ref, p_ref, t_ref, pinv_ref, tinv_ref):
    """Per-row inverse L2 norms; exp(logit_scale) folded into the protein side."""
    logit_scale = jnp.exp(scale_ref[0])                      # raw param -> exp here
    p = p_ref[...].astype(jnp.float32)
    t = t_ref[...].astype(jnp.float32)
    p_ss = jnp.sum(p * p, axis=1, keepdims=True)             # (tile, 1)
    t_ss = jnp.sum(t * t, axis=1, keepdims=True)             # (tile, 1)
    # eps guard: zero (padded) rows stay finite and produce exactly-zero logits.
    pinv_ref[...] = logit_scale * lax.rsqrt(jnp.maximum(p_ss, _EPS))
    tinv_ref[...] = lax.rsqrt(jnp.maximum(t_ss, _EPS))


def logits_kernel(pinv_ref, tinv_ref, p_ref, t_ref, lp_ref, lt_ref):
    """One (tile, tile) tile of logits_per_protein (+ transposed tile for logits_per_text)."""
    # Column scaling is applied to the text operand (lane broadcast over (tile, D)),
    # so the f32 accumulator only needs the row-wise protein scale.
    t_scaled = (t_ref[...].astype(jnp.float32) * tinv_ref[...]).astype(t_ref.dtype)
    acc = lax.dot_general(
        p_ref[...], t_scaled,
        dimension_numbers=(((1,), (1,)), ((), ())),          # contract dim 1 of both
        preferred_element_type=jnp.float32,
    )
    logits = acc * pinv_ref[...]                             # pinv carries exp(logit_scale)
    lp_ref[...] = logits
    lt_ref[...] = logits.T                                   # tile-level transpose only


def clip_forward(protein_features, protein_attention_mask, text_features,
                 text_attention_mask, logit_scale_param, *, tile=None):
    """Returns (logits_per_protein, logits_per_text), matching CLIPModule.forward."""
    # Attention masks are unused by the reference forward; accepted for parity.
    del protein_attention_mask, text_attention_mask
    B, D = protein_features.shape
    assert text_features.shape == (B, D), "protein/text feature dims must match"

    if tile is None:
        tile = min(256, _round_up(B, 128))   # 256 fills v6e/v7x MXU; 128-multiple for v5e
    Bp = _round_up(B, tile)
    Dp = _round_up(D, 128)                   # lane-aligned contraction dim

    p, t = protein_features, text_features
    if (Bp, Dp) != (B, D):
        p = jnp.pad(p, ((0, Bp - B), (0, Dp - D)))
        t = jnp.pad(t, ((0, Bp - B), (0, Dp - D)))

    scale = jnp.asarray(logit_scale_param, jnp.float32).reshape((1,))
    in_bytes = p.dtype.itemsize
    vmem_limit = 48 * 1024 * 1024            # headroom, below v7x's 64 MiB physical VMEM

    # Pass 1: per-row inverse norms (hoisted out of the (i, j) matmul grid).
    pinv, tinv = pl.pallas_call(
        rownorm_kernel,
        out_shape=(jax.ShapeDtypeStruct((Bp, 1), jnp.float32),
                   jax.ShapeDtypeStruct((Bp, 1), jnp.float32)),
        grid=(Bp // tile,),
        in_specs=[
            pl.BlockSpec(memory_space=pltpu.MemorySpace.SMEM),   # logit_scale param
            pl.BlockSpec((tile, Dp), lambda i: (i, 0)),          # protein row panel
            pl.BlockSpec((tile, Dp), lambda i: (i, 0)),          # text row panel
        ],
        out_specs=(
            pl.BlockSpec((tile, 1), lambda i: (i, 0)),
            pl.BlockSpec((tile, 1), lambda i: (i, 0)),
        ),
        compiler_params=pltpu.CompilerParams(
            dimension_semantics=("parallel",),
            vmem_limit_bytes=vmem_limit),
        cost_estimate=pl.CostEstimate(
            flops=4 * Bp * Dp,
            transcendentals=2 * Bp + 1,
            bytes_accessed=2 * Bp * Dp * in_bytes + 2 * Bp * 4),
    )(scale, p, t)

    # Pass 2: tiled (i, j) similarity grid; logits_per_text is produced per tile
    # through a swapped (j, i) output BlockSpec instead of a full (B, B) transpose.
    lp, lt = pl.pallas_call(
        logits_kernel,
        out_shape=(jax.ShapeDtypeStruct((Bp, Bp), jnp.float32),
                   jax.ShapeDtypeStruct((Bp, Bp), jnp.float32)),
        grid=(Bp // tile, Bp // tile),
        in_specs=[
            pl.BlockSpec((tile, 1), lambda i, j: (i, 0)),    # pinv (row scale, has exp(s))
            pl.BlockSpec((tile, 1), lambda i, j: (j, 0)),    # tinv (text-side scale)
            pl.BlockSpec((tile, Dp), lambda i, j: (i, 0)),   # protein panel (reused over j)
            pl.BlockSpec((tile, Dp), lambda i, j: (j, 0)),   # text panel
        ],
        out_specs=(
            pl.BlockSpec((tile, tile), lambda i, j: (i, j)),  # logits_per_protein
            pl.BlockSpec((tile, tile), lambda i, j: (j, i)),  # logits_per_text
        ),
        compiler_params=pltpu.CompilerParams(
            dimension_semantics=("parallel", "parallel"),
            vmem_limit_bytes=vmem_limit),
        cost_estimate=pl.CostEstimate(
            flops=2 * Bp * Bp * Dp,
            transcendentals=0,
            bytes_accessed=(1 + Bp // tile) * Bp * Dp * in_bytes + 2 * Bp * Bp * 4),
    )(pinv, tinv, p, t)

    if Bp != B:
        lp = lp[:B, :B]
        lt = lt[:B, :B]
    return lp, lt


def reference_forward(protein_features, text_features, logit_scale_param):
    p = protein_features.astype(jnp.float32)
    t = text_features.astype(jnp.float32)
    p = p / jnp.linalg.norm(p, axis=1, keepdims=True)
    t = t / jnp.linalg.norm(t, axis=1, keepdims=True)
    scale = jnp.exp(jnp.asarray(logit_scale_param, jnp.float32))
    lp = scale * (p @ t.T)
    return lp, lp.T


if __name__ == "__main__":
    temperature = 0.07
    logit_scale_param = jnp.log(jnp.float32(1.0 / temperature))   # nn.Parameter init
    key = jax.random.PRNGKey(0)

    configs = [
        # (batch, dim, dtype, atol): lane-aligned f32 path, then padded bf16 path.
        (128, 256, jnp.float32, 5e-3),
        (96, 200, jnp.bfloat16, 5e-2),
    ]
    for B, D, dtype, atol in configs:
        key, k1, k2 = jax.random.split(key, 3)
        protein_features = jax.random.normal(k1, (B, D), jnp.float32).astype(dtype)
        text_features = jax.random.normal(k2, (B, D), jnp.float32).astype(dtype)
        protein_attention_mask = jnp.ones((B, D), jnp.int32)   # unused by forward
        text_attention_mask = jnp.ones((B, D), jnp.int32)      # unused by forward

        lp, lt = clip_forward(protein_features, protein_attention_mask,
                              text_features, text_attention_mask,
                              logit_scale_param)
        jax.block_until_ready((lp, lt))

        lp_ref, lt_ref = reference_forward(protein_features, text_features,
                                           logit_scale_param)
        assert lp.shape == (B, B) and lt.shape == (B, B)
        assert jnp.allclose(lp, lp_ref, atol=atol, rtol=1e-2), (B, D, dtype)
        assert jnp.allclose(lt, lt_ref, atol=atol, rtol=1e-2), (B, D, dtype)
        assert jnp.array_equal(lt, lp.T), (B, D, dtype)

    print("KERNEL_OK")
</pallas_src>

<mosaic_0001>
module attributes {stable_mosaic.version = 11 : i64} {
  func.func @rownorm_kernel(%arg0: i32, %arg1: memref<1xf32, #tpu.memory_space<smem>>, %arg2: memref<128x256xf32, #tpu.memory_space<vmem>>, %arg3: memref<128x256xf32, #tpu.memory_space<vmem>>, %arg4: memref<128x1xf32, #tpu.memory_space<vmem>>, %arg5: memref<128x1xf32, #tpu.memory_space<vmem>>) attributes {dimension_semantics = [#tpu.dimension_semantics<parallel>], iteration_bounds = array<i64: 1>, scalar_prefetch = 0 : i64, scratch_operands = 0 : i64, tpu.core_type = #tpu.core_type<tc>, window_params = [{transform_indices = @transform_0, window_bounds = array<i64: 1>}, {transform_indices = @transform_1, window_bounds = array<i64: 128, 256>}, {transform_indices = @transform_2, window_bounds = array<i64: 128, 256>}, {transform_indices = @transform_3, window_bounds = array<i64: 128, 1>}, {transform_indices = @transform_4, window_bounds = array<i64: 128, 1>}]} {
    %c0 = arith.constant 0 : index
    %0 = memref.load %arg1[%c0] : memref<1xf32, #tpu.memory_space<smem>>
    %1 = math.exp %0 : f32
    %c0_0 = arith.constant 0 : index
    %c0_1 = arith.constant 0 : index
    %2 = vector.load %arg2[%c0_0, %c0_1] : memref<128x256xf32, #tpu.memory_space<vmem>>, vector<128x256xf32>
    %c0_2 = arith.constant 0 : index
    %c0_3 = arith.constant 0 : index
    %3 = vector.load %arg3[%c0_2, %c0_3] : memref<128x256xf32, #tpu.memory_space<vmem>>, vector<128x256xf32>
    %4 = arith.mulf %2, %2 : vector<128x256xf32>
    %cst = arith.constant dense<0.000000e+00> : vector<128xf32>
    %5 = vector.multi_reduction <add>, %4, %cst [1] : vector<128x256xf32> to vector<128xf32>
    %6 = vector.shape_cast %5 : vector<128xf32> to vector<128x1xf32>
    %7 = arith.mulf %3, %3 : vector<128x256xf32>
    %cst_4 = arith.constant dense<0.000000e+00> : vector<128xf32>
    %8 = vector.multi_reduction <add>, %7, %cst_4 [1] : vector<128x256xf32> to vector<128xf32>
    %9 = vector.shape_cast %8 : vector<128xf32> to vector<128x1xf32>
    %cst_5 = arith.constant 9.99999996E-13 : f32
    %10 = vector.broadcast %cst_5 : f32 to vector<128x1xf32>
    %11 = arith.maximumf %6, %10 : vector<128x1xf32>
    %12 = math.rsqrt %11 : vector<128x1xf32>
    %13 = vector.broadcast %1 : f32 to vector<128x1xf32>
    %14 = arith.mulf %13, %12 : vector<128x1xf32>
    %c0_6 = arith.constant 0 : index
    %c0_7 = arith.constant 0 : index
    %15 = vector.load %arg4[%c0_6, %c0_7] : memref<128x1xf32, #tpu.memory_space<vmem>>, vector<128x1xf32>
    tpu.vector_store %arg4[%c0_6, %c0_7], %14 {strides = array<i32>} : memref<128x1xf32, #tpu.memory_space<vmem>>, vector<128x1xf32>,
    %cst_8 = arith.constant 9.99999996E-13 : f32
    %16 = vector.broadcast %cst_8 : f32 to vector<128x1xf32>
    %17 = arith.maximumf %9, %16 : vector<128x1xf32>
    %18 = math.rsqrt %17 : vector<128x1xf32>
    %c0_9 = arith.constant 0 : index
    %c0_10 = arith.constant 0 : index
    %19 = vector.load %arg5[%c0_9, %c0_10] : memref<128x1xf32, #tpu.memory_space<vmem>>, vector<128x1xf32>
    tpu.vector_store %arg5[%c0_9, %c0_10], %18 {strides = array<i32>} : memref<128x1xf32, #tpu.memory_space<vmem>>, vector<128x1xf32>,
    return
  }
  func.func @transform_0(%arg0: i32) -> i32 {
    %c0_i32 = arith.constant 0 : i32
    %c0_i32_0 = arith.constant 0 : i32
    return %c0_i32 : i32
  }
  func.func @transform_1(%arg0: i32) -> (i32, i32) {
    %c0_i32 = arith.constant 0 : i32
    %c0_i32_0 = arith.constant 0 : i32
    return %arg0, %c0_i32 : i32, i32
  }
  func.func @transform_2(%arg0: i32) -> (i32, i32) {
    %c0_i32 = arith.constant 0 : i32
    %c0_i32_0 = arith.constant 0 : i32
    return %arg0, %c0_i32 : i32, i32
  }
  func.func @transform_3(%arg0: i32) -> (i32, i32) {
    %c0_i32 = arith.constant 0 : i32
    %c0_i32_0 = arith.constant 0 : i32
    return %arg0, %c0_i32 : i32, i32
  }
  func.func @transform_4(%arg0: i32) -> (i32, i32) {
    %c0_i32 = arith.constant 0 : i32
    %c0_i32_0 = arith.constant 0 : i32
    return %arg0, %c0_i32 : i32, i32
  }
}

</mosaic_0001>

<bundles_post_ra>
// kernel: tpu_custom_call.1
= control target key start
LH: loop header
LB: loop body
LE: loop exit
PB: predicated region body
PF: predicated region fallthrough
CT: control target
= control target key end

     0   :  { %11 = vsyncpa [#allocation4], 0  ;;  %s1381_s0 = inlined_call_operand.<no memory space> [shape: f32[1], index: 0, kind: input, shape index: {}]   ;;  %s1382_s1 = inlined_call_operand.hbm [shape: f32[128,256], index: 1, kind: input, shape index: {}]   ;;  %s1383_s2 = inlined_call_operand.hbm [shape: f32[128,256], index: 2, kind: input, shape index: {}]   ;;  %s1384_s3 = inlined_call_operand.vmem [shape: f32[128,1], index: 3, kind: output, shape index: {0}]   ;;  %s1385_s4 = inlined_call_operand.vmem [shape: f32[128,1], index: 4, kind: output, shape index: {1}]  }
   0x1   :  { %s19_s17 = sshll.u32 %s1382_s1, 4  ;;  %s20_s17 = int_to_ptr.hbm [resolvable:$true] %s19_s17 }
   0x2   :  { %12 = vsyncpa [#allocation6], 0  ;;  %s814_s18 = smov [#allocation3]   ;;  %s32_s22 = sshll.u32 %s1383_s2, 4  ;;  %s33_s22 = int_to_ptr.hbm [resolvable:$true] %s32_s22 }
   0x3   :  { %s21_s19 = sshll.u32 %s814_s18, 4  ;;  %s815_s23 = smov 256   ;;  %s22_s19 = int_to_ptr.vmem [resolvable:$true] %s21_s19 }
   0x4   :  { %s816_s24 = smov 16   ;;  %s817_s25 = smov [#allocation5]  }
   0x5   :  { %27 = dma.hbm_to_vmem [thread:$0]  %s20_s17, 4096, %s22_s19, [#allocation4], %s815_s23, %s815_s23, %s816_s24  }
   0x6   :  { %s34_s26 = sshll.u32 %s817_s25, 4  ;;  %s35_s26 = int_to_ptr.vmem [resolvable:$true] %s34_s26 }
   0x7   :  { %40 = dma.hbm_to_vmem [thread:$0]  %s33_s22, 4096, %s35_s26, [#allocation6], %s815_s23, %s815_s23, %s816_s24  }
   0x8   :  { %810 = dma.done.wait [#allocation4], 4096  }
   0x9   :  { %811 = vsyncadd [#allocation4], 4294963200 }
   0xa   :  { %812 = dma.done.wait [#allocation6], 4096  }
   0xb   :  { %813 = vsyncadd [#allocation6], 4294963200  ;;  %v62_v0 = vld [vmem:[#allocation3 + $0x40] sm:$0xff]  ;;  %v63_v1 = vld [vmem:[#allocation3 + $0x48] sm:$0xff]  ;;  %vm471_vm0 = vcmask 7168  }
   0xc   :  { %v58_v2 = vld [vmem:[#allocation3 + $0x20] sm:$0xff]  ;;  %v126_v3 = vmul.f32 %v62_v0, %v62_v0  ;;  %v127_v4 = vmul.f32 %v63_v1, %v63_v1  ;;  %v59_v5 = vld [vmem:[#allocation3 + $0x28] sm:$0xff]  ;;  %v64_v12 = vld [vmem:[#allocation3 + $0x50] sm:$0xff] }
   0xd   :  { %v122_v6 = vmul.f32 %v58_v2, %v58_v2  ;;  %v54_v7 = vld [vmem:[#allocation3] sm:$0xff]  ;;  %v55_v8 = vld [vmem:[#allocation3 + $0x8] sm:$0xff]  ;;  %v123_v9 = vmul.f32 %v59_v5, %v59_v5  ;;  %v65_v13 = vld [vmem:[#allocation3 + $0x58] sm:$0xff]  ;;  %v128_v21 = vmul.f32 %v64_v12, %v64_v12 }
   0xe   :  { %v118_v10 = vmul.f32 %v54_v7, %v54_v7  ;;  %v119_v11 = vmul.f32 %v55_v8, %v55_v8  ;;  %v60_v14 = vld [vmem:[#allocation3 + $0x30] sm:$0xff]  ;;  %v162_v15 = vadd.f32 %v127_v4, %v126_v3  ;;  %v61_v16 = vld [vmem:[#allocation3 + $0x38] sm:$0xff]  ;;  %v129_v22 = vmul.f32 %v65_v13, %v65_v13  ;;  %v70_v30 = vld [vmem:[#allocation3 + $0x80] sm:$0xff] }
   0xf   :  { %v56_v17 = vld [vmem:[#allocation3 + $0x10] sm:$0xff]  ;;  %v57_v18 = vld [vmem:[#allocation3 + $0x18] sm:$0xff]  ;;  %v156_v19 = vadd.f32 %v123_v9, %v122_v6  ;;  %v124_v23 = vmul.f32 %v60_v14, %v60_v14  ;;  %v125_v24 = vmul.f32 %v61_v16, %v61_v16  ;;  %v71_v31 = vld [vmem:[#allocation3 + $0x88] sm:$0xff]  ;;  %v134_v36 = vmul.f32 %v70_v30, %v70_v30 }
  0x10   :  { %v150_v20 = vadd.f32 %v119_v11, %v118_v10  ;;  %163 = vadd.xlane.f32.xlu2 %v162_v15  ;;  %v120_v25 = vmul.f32 %v56_v17, %v56_v17  ;;  %v121_v26 = vmul.f32 %v57_v18, %v57_v18  ;;  %v165_v27 = vadd.f32 %v129_v22, %v128_v21  ;;  %v68_v32 = vld [vmem:[#allocation3 + $0x70] sm:$0xff]  ;;  %v69_v33 = vld [vmem:[#allocation3 + $0x78] sm:$0xff]  ;;  %v66_v34 = vld [vmem:[#allocation3 + $0x60] sm:$0xff] }
  0x11   :  { %157 = vadd.xlane.f32.xlu1 %v156_v19  ;;  %v159_v28 = vadd.f32 %v125_v24, %v124_v23  ;;  %v67_v35 = vld [vmem:[#allocation3 + $0x68] sm:$0xff]  ;;  %v135_v37 = vmul.f32 %v71_v31, %v71_v31  ;;  %v132_v38 = vmul.f32 %v68_v32, %v68_v32  ;;  %v133_v39 = vmul.f32 %v69_v33, %v69_v33  ;;  %v76_v45 = vld [vmem:[#allocation3 + $0xb0] sm:$0xff]  ;;  %v77_v46 = vld [vmem:[#allocation3 + $0xb8] sm:$0xff] }
  0x12   :  { %151 = vadd.xlane.f32.xlu0 %v150_v20  ;;  %v153_v29 = vadd.f32 %v121_v26, %v120_v25  ;;  %v130_v40 = vmul.f32 %v66_v34, %v66_v34  ;;  %v131_v41 = vmul.f32 %v67_v35, %v67_v35  ;;  %v74_v47 = vld [vmem:[#allocation3 + $0xa0] sm:$0xff]  ;;  %v75_v48 = vld [vmem:[#allocation3 + $0xa8] sm:$0xff]  ;;  %v72_v49 = vld [vmem:[#allocation3 + $0x90] sm:$0xff]  ;;  %v140_v51 = vmul.f32 %v76_v45, %v76_v45 }
  0x13   :  { %v174_v42 = vadd.f32 %v135_v37, %v134_v36  ;;  %v171_v43 = vadd.f32 %v133_v39, %v132_v38  ;;  %v73_v50 = vld [vmem:[#allocation3 + $0x98] sm:$0xff]  ;;  %v141_v52 = vmul.f32 %v77_v46, %v77_v46  ;;  %v138_v53 = vmul.f32 %v74_v47, %v74_v47  ;;  %v82_v60 = vld [vmem:[#allocation3 + $0xe0] sm:$0xff]  ;;  %v83_v61 = vld [vmem:[#allocation3 + $0xe8] sm:$0xff] }
  0x14   :  { %v168_v44 = vadd.f32 %v131_v41, %v130_v40  ;;  %v139_v54 = vmul.f32 %v75_v48, %v75_v48  ;;  %v136_v55 = vmul.f32 %v72_v49, %v72_v49  ;;  %v137_v56 = vmul.f32 %v73_v50, %v73_v50  ;;  %v80_v62 = vld [vmem:[#allocation3 + $0xd0] sm:$0xff]  ;;  %v81_v63 = vld [vmem:[#allocation3 + $0xd8] sm:$0xff]  ;;  %v78_v0 = vld [vmem:[#allocation3 + $0xc0] sm:$0xff] }
  0x15   :  { %v183_v57 = vadd.f32 %v141_v52, %v140_v51  ;;  %v79_v1 = vld [vmem:[#allocation3 + $0xc8] sm:$0xff]  ;;  %v146_v2 = vmul.f32 %v82_v60, %v82_v60  ;;  %v147_v3 = vmul.f32 %v83_v61, %v83_v61  ;;  %v144_v4 = vmul.f32 %v80_v62, %v80_v62  ;;  %v88_v11 = vld [vmem:[#allocation5 + $0x10] sm:$0xff]  ;;  %v89_v12 = vld [vmem:[#allocation5 + $0x18] sm:$0xff] }
  0x16   :  { %v180_v58 = vadd.f32 %v139_v54, %v138_v53  ;;  %v177_v59 = vadd.f32 %v137_v56, %v136_v55  ;;  %v145_v5 = vmul.f32 %v81_v63, %v81_v63  ;;  %v142_v6 = vmul.f32 %v78_v0, %v78_v0  ;;  %v86_v13 = vld [vmem:[#allocation5] sm:$0xff]  ;;  %v87_v14 = vld [vmem:[#allocation5 + $0x8] sm:$0xff]  ;;  %v84_v15 = vld [vmem:[#allocation3 + $0xf0] sm:$0xff] }
  0x17   :  { %v143_v7 = vmul.f32 %v79_v1, %v79_v1  ;;  %v192_v8 = vadd.f32 %v147_v3, %v146_v2  ;;  %v85_v16 = vld [vmem:[#allocation3 + $0xf8] sm:$0xff]  ;;  %v200_v17 = vmul.f32 %v88_v11, %v88_v11  ;;  %v201_v18 = vmul.f32 %v89_v12, %v89_v12  ;;  %v94_v26 = vld [vmem:[#allocation5 + $0x40] sm:$0xff]  ;;  %v91_v31 = vld [vmem:[#allocation5 + $0x28] sm:$0xff] }
  0x18   :  { %166 = vadd.xlane.f32.xlu2 %v165_v27  ;;  %v189_v9 = vadd.f32 %v145_v5, %v144_v4  ;;  %v198_v19 = vmul.f32 %v86_v13, %v86_v13  ;;  %v199_v20 = vmul.f32 %v87_v14, %v87_v14  ;;  %v148_v21 = vmul.f32 %v84_v15, %v84_v15  ;;  %v95_v27 = vld [vmem:[#allocation5 + $0x48] sm:$0xff]  ;;  %v90_v30 = vld [vmem:[#allocation5 + $0x20] sm:$0xff]  ;;  %v96_v47 = vld [vmem:[#allocation5 + $0x50] sm:$0xff] }
  0x19   :  { %160 = vadd.xlane.f32.xlu1 %v159_v28  ;;  %v186_v10 = vadd.f32 %v143_v7, %v142_v6  ;;  %v149_v22 = vmul.f32 %v85_v16, %v85_v16  ;;  %v233_v23 = vadd.f32 %v201_v18, %v200_v17  ;;  %v92_v28 = vld [vmem:[#allocation5 + $0x30] sm:$0xff]  ;;  %v206_v32 = vmul.f32 %v94_v26, %v94_v26  ;;  %v99_v46 = vld [vmem:[#allocation5 + $0x68] sm:$0xff]  ;;  %v97_v48 = vld [vmem:[#allocation5 + $0x58] sm:$0xff] }
  0x1a   :  { %154 = vadd.xlane.f32.xlu0 %v153_v29  ;;  %v230_v24 = vadd.f32 %v199_v20, %v198_v19  ;;  %v93_v29 = vld [vmem:[#allocation5 + $0x38] sm:$0xff]  ;;  %v207_v33 = vmul.f32 %v95_v27, %v95_v27  ;;  %v204_v34 = vmul.f32 %v92_v28, %v92_v28  ;;  %v202_v36 = vmul.f32 %v90_v30, %v90_v30  ;;  %v107_v60 = vld [vmem:[#allocation5 + $0xa8] sm:$0xff]  ;;  %v104_v61 = vld [vmem:[#allocation5 + $0x90] sm:$0xff] }
  0x1b   :  { %v195_v25 = vadd.f32 %v149_v22, %v148_v21  ;;  %v205_v35 = vmul.f32 %v93_v29, %v93_v29  ;;  %v203_v37 = vmul.f32 %v91_v31, %v91_v31  ;;  %v50_v39 = vstv %s1381_s0  ;;  %v105_v62 = vld [vmem:[#allocation5 + $0x98] sm:$0xff]  ;;  %v102_v63 = vld [vmem:[#allocation5 + $0x80] sm:$0xff]  ;;  %v103_v0 = vld [vmem:[#allocation5 + $0x88] sm:$0xff] }
  0x1c   :  { %v242_v38 = vadd.f32 %v207_v33, %v206_v32  ;;  %v51_v45 = vmul.f32 1.442695, %v50_v39  ;;  %v211_v52 = vmul.f32 %v99_v46, %v99_v46  ;;  %v208_v53 = vmul.f32 %v96_v47, %v96_v47  ;;  %v113_v11 = vld [vmem:[#allocation5 + $0xd8] sm:$0xff]  ;;  %v110_v12 = vld [vmem:[#allocation5 + $0xc0] sm:$0xff]  ;;  %v111_v13 = vld [vmem:[#allocation5 + $0xc8] sm:$0xff] }
  0x1d   :  { %v239_v40 = vadd.f32 %v205_v35, %v204_v34  ;;  %v236_v41 = vadd.f32 %v203_v37, %v202_v36  ;;  %v209_v54 = vmul.f32 %v97_v48, %v97_v48  ;;  %v219_v2 = vmul.f32 %v107_v60, %v107_v60  ;;  %v108_v14 = vld [vmem:[#allocation5 + $0xb0] sm:$0xff]  ;;  %v109_v15 = vld [vmem:[#allocation5 + $0xb8] sm:$0xff]  ;;  %v114_v27 = vld [vmem:[#allocation5 + $0xe0] sm:$0xff] }
  0x1e   :  { %696 = vpow2.f32 %v51_v45  ;;  %v216_v3 = vmul.f32 %v104_v61, %v104_v61  ;;  %v217_v4 = vmul.f32 %v105_v62, %v105_v62  ;;  %v214_v5 = vmul.f32 %v102_v63, %v102_v63  ;;  %v117_v26 = vld [vmem:[#allocation5 + $0xf8] sm:$0xff]  ;;  %v115_v28 = vld [vmem:[#allocation5 + $0xe8] sm:$0xff] }
  0x1f   :  { %v215_v6 = vmul.f32 %v103_v0, %v103_v0  ;;  %v225_v17 = vmul.f32 %v113_v11, %v113_v11  ;;  %v222_v18 = vmul.f32 %v110_v12, %v110_v12  ;;  %v223_v19 = vmul.f32 %v111_v13, %v111_v13 }
  0x20   :  { %175 = vadd.xlane.f32.xlu2 %v174_v42  ;;  %v100_v42 = vld [vmem:[#allocation5 + $0x70] sm:$0xff]  ;;  %v220_v20 = vmul.f32 %v108_v14, %v108_v14  ;;  %v221_v21 = vmul.f32 %v109_v15, %v109_v15  ;;  %v229_v30 = vmul.f32 %v117_v26, %v117_v26  ;;  %v226_v31 = vmul.f32 %v114_v27, %v114_v27 }
  0x21   :  { %172 = vadd.xlane.f32.xlu1 %v171_v43  ;;  %v101_v43 = vld [vmem:[#allocation5 + $0x78] sm:$0xff]  ;;  %v212_v49 = vmul.f32 %v100_v42, %v100_v42  ;;  %v227_v32 = vmul.f32 %v115_v28, %v115_v28 }
  0x22   :  { %169 = vadd.xlane.f32.xlu0 %v168_v44  ;;  %v98_v44 = vld [vmem:[#allocation5 + $0x60] sm:$0xff]  ;;  %v213_v50 = vmul.f32 %v101_v43, %v101_v43 }
  0x23   :  { %v210_v51 = vmul.f32 %v98_v44, %v98_v44  ;;  %v272_v34 = vadd.f32 %v227_v32, %v226_v31 }
  0x24   :  { %v251_v55 = vadd.f32 %v213_v50, %v212_v49  ;;  %v697_v56 = vpop.eup %696 }
  0x25   :  { %690 = vpush %v697_v56 }
  0x28   :  { %184 = vadd.xlane.f32.xlu2 %v183_v57  ;;  %v248_v57 = vadd.f32 %v211_v52, %v210_v51 }
  0x29   :  { %181 = vadd.xlane.f32.xlu1 %v180_v58  ;;  %v245_v58 = vadd.f32 %v209_v54, %v208_v53 }
  0x2a   :  { %178 = vadd.xlane.f32.xlu0 %v177_v59  ;;  %v106_v59 = vld [vmem:[#allocation5 + $0xa0] sm:$0xff] }
  0x2b   :  { %v218_v1 = vmul.f32 %v106_v59, %v106_v59 }
  0x2d   :  { %v260_v7 = vadd.f32 %v219_v2, %v218_v1 }
  0x30   :  { %193 = vadd.xlane.f32.xlu2 %v192_v8  ;;  %v257_v8 = vadd.f32 %v217_v4, %v216_v3 }
  0x31   :  { %190 = vadd.xlane.f32.xlu1 %v189_v9  ;;  %v254_v9 = vadd.f32 %v215_v6, %v214_v5 }
  0x32   :  { %187 = vadd.xlane.f32.xlu0 %v186_v10  ;;  %v112_v10 = vld [vmem:[#allocation5 + $0xd0] sm:$0xff] }
  0x33   :  { %v224_v16 = vmul.f32 %v112_v10, %v112_v10 }
  0x35   :  { %v269_v22 = vadd.f32 %v225_v17, %v224_v16 }
  0x38   :  { %234 = vadd.xlane.f32.xlu2 %v233_v23  ;;  %v266_v23 = vadd.f32 %v223_v19, %v222_v18 }
  0x39   :  { %231 = vadd.xlane.f32.xlu1 %v230_v24  ;;  %v263_v24 = vadd.f32 %v221_v21, %v220_v20 }
  0x3a   :  { %196 = vadd.xlane.f32.xlu0 %v195_v25  ;;  %v116_v25 = vld [vmem:[#allocation5 + $0xf0] sm:$0xff] }
  0x3b   :  { %v228_v29 = vmul.f32 %v116_v25, %v116_v25 }
  0x3d   :  { %v275_v33 = vadd.f32 %v229_v30, %v228_v29 }
  0x40   :  { %243 = vadd.xlane.f32.xlu2 %v242_v38 }
  0x41   :  { %240 = vadd.xlane.f32.xlu1 %v239_v40 }
  0x42   :  { %237 = vadd.xlane.f32.xlu0 %v236_v41 }
  0x48   :  { %252 = vadd.xlane.f32.xlu2 %v251_v55 }
  0x49   :  { %249 = vadd.xlane.f32.xlu1 %v248_v57 }
  0x4a   :  { %246 = vadd.xlane.f32.xlu0 %v245_v58 }
  0x50   :  { %261 = vadd.xlane.f32.xlu2 %v260_v7 }
  0x51   :  { %258 = vadd.xlane.f32.xlu1 %v257_v8 }
  0x52   :  { %255 = vadd.xlane.f32.xlu0 %v254_v9 }
  0x56   :  { %s691_s0 = spop %690 }
  0x57   :  { %v865_v58 = vstv %s691_s0 }
  0x58   :  { %270 = vadd.xlane.f32.xlu2 %v269_v22 }
  0x59   :  { %267 = vadd.xlane.f32.xlu1 %v266_v23 }
  0x5a   :  { %264 = vadd.xlane.f32.xlu0 %v263_v24 }
  0x61   :  { %276 = vadd.xlane.f32.xlu1 %v275_v33 }
  0x62   :  { %273 = vadd.xlane.f32.xlu0 %v272_v34 }
  0x83   :  { %v164_v35 = vpop.xlane.xlu2 %163 }
  0x84   :  { %v282_v36 = vmax.f32 %v164_v35, 1e-12  ;;  %v158_v37 = vpop.xlane.xlu1 %157 }
  0x85   :  { %v152_v38 = vpop.xlane.xlu0 %151  ;;  %v280_v39 = vmax.f32 %v158_v37, 1e-12 }
  0x86   :  { %v278_v40 = vmax.f32 %v152_v38, 1e-12  ;;  %698 = vrsqrt.f32 %v282_v36  ;;  %vm340_vm1 = vweird.f32 %v282_v36 }
  0x87   :  { %700 = vrsqrt.f32 %v280_v39  ;;  %vm320_vm3 = vweird.f32 %v280_v39 }
  0x88   :  { %702 = vrsqrt.f32 %v278_v40  ;;  %vm300_vm7 = vweird.f32 %v278_v40 }
  0x8b   :  { %v167_v41 = vpop.xlane.xlu2 %166 }
  0x8c   :  { %v852_v42 = vpop.eup %698  ;;  %v854_v43 = vmax.f32 %v167_v41, 1e-12  ;;  %v161_v44 = vpop.xlane.xlu1 %160 }
  0x8d   :  { %v155_v45 = vpop.xlane.xlu0 %154  ;;  %v701_v46 = vpop.eup %700  ;;  %v335_v47 = vmul.f32 %v852_v42, %v282_v36  ;;  %v857_v48 = vmax.f32 %v161_v44, 1e-12  ;;  %vm341_vm2 = vweird.f32 %v852_v42 }
  0x8e   :  { %v859_v49 = vmax.f32 %v155_v45, 1e-12  ;;  %v703_v50 = vpop.eup %702  ;;  %v315_v51 = vmul.f32 %v701_v46, %v280_v39  ;;  %704 = vrsqrt.f32 %v854_v43  ;;  %vm321_vm4 = vweird.f32 %v701_v46  ;;  %vm882_vm6 = vmor %vm340_vm1, %vm341_vm2 }
  0x8f   :  { %v336_v52 = vmul.f32 %v852_v42, %v335_v47  ;;  %v295_v53 = vmul.f32 %v703_v50, %v278_v40  ;;  %706 = vrsqrt.f32 %v857_v48  ;;  %vm301_vm5 = vweird.f32 %v703_v50  ;;  %vm891_vm8 = vmor %vm320_vm3, %vm321_vm4 }
  0x90   :  { %v316_v54 = vmul.f32 %v701_v46, %v315_v51  ;;  %708 = vrsqrt.f32 %v859_v49  ;;  %vm350_vm9 = vweird.f32 %v854_v43  ;;  %vm302_vm10 = vmor %vm300_vm7, %vm301_vm5  ;;  %vm330_vm11 = vweird.f32 %v857_v48 }
  0x91   :  { %v337_v55 = vmul.f32 0.5, %v336_v52  ;;  %v296_v56 = vmul.f32 %v703_v50, %v295_v53  ;;  %vm310_vm1 = vweird.f32 %v859_v49 }
  0x92   :  { %v317_v57 = vmul.f32 0.5, %v316_v54 }
  0x93   :  { %v338_v59 = vsub.f32 1.5, %v337_v55  ;;  %v297_v60 = vmul.f32 0.5, %v296_v56  ;;  %v176_v61 = vpop.xlane.xlu2 %175 }
  0x94   :  { %v868_v62 = vpop.eup %704  ;;  %v318_v63 = vsub.f32 1.5, %v317_v57  ;;  %v870_v0 = vmax.f32 %v176_v61, 1e-12  ;;  %v173_v1 = vpop.xlane.xlu1 %172 }
  0x95   :  { %v170_v2 = vpop.xlane.xlu0 %169  ;;  %v872_v3 = vpop.eup %706  ;;  %v339_v4 = vmul.f32 %v852_v42, %v338_v59  ;;  %v298_v5 = vsub.f32 1.5, %v297_v60  ;;  %v345_v6 = vmul.f32 %v868_v62, %v854_v43  ;;  %v908_v21 = vmax.f32 %v173_v1, 1e-12 }
  0x96   :  { %v877_v7 = vpop.eup %708  ;;  %v319_v9 = vmul.f32 %v701_v46, %v318_v63  ;;  %v325_v10 = vmul.f32 %v872_v3, %v857_v48  ;;  %710 = vrsqrt.f32 %v870_v0  ;;  %v910_v23 = vmax.f32 %v170_v2, 1e-12 }
  0x97   :  { %v299_v12 = vmul.f32 %v703_v50, %v298_v5  ;;  %v346_v13 = vmul.f32 %v868_v62, %v345_v6  ;;  %v305_v14 = vmul.f32 %v877_v7, %v859_v49  ;;  %v343_v15 = vsel %vm882_vm6, %v852_v42, %v339_v4 }
  0x98   :  { %v323_v16 = vsel %vm891_vm8, %v701_v46, %v319_v9  ;;  %v326_v17 = vmul.f32 %v872_v3, %v325_v10  ;;  %vm351_vm12 = vweird.f32 %v868_v62  ;;  %712 = vrsqrt.f32 %v908_v21 }
  0x99   :  { %v303_v18 = vsel %vm302_vm10, %v703_v50, %v299_v12  ;;  %v347_v19 = vmul.f32 0.5, %v346_v13  ;;  %v306_v20 = vmul.f32 %v877_v7, %v305_v14  ;;  %v457_v25 = vmul.f32 %v865_v58, %v323_v16  ;;  %vm352_vm15 = vmor %vm350_vm9, %vm351_vm12 }
  0x9a   :  { %v327_v22 = vmul.f32 0.5, %v326_v17  ;;  %v455_v24 = vmul.f32 %v865_v58, %v303_v18  ;;  %vm331_vm13 = vweird.f32 %v872_v3  ;;  %714 = vrsqrt.f32 %v910_v23 }
  0x9b   :  { %v348_v26 = vsub.f32 1.5, %v347_v19  ;;  %v307_v27 = vmul.f32 0.5, %v306_v20  ;;  %v185_v28 = vpop.xlane.xlu2 %184  ;;  %v459_v31 = vmul.f32 %v865_v58, %v343_v15  ;;  %vm311_vm14 = vweird.f32 %v877_v7  ;;  %474 = vst.msk [vmem:[%s1384_s3 + $0x10] sm:$0xff] %vm471_vm0, %v457_v25  ;;  %vm332_vm2 = vmor %vm330_vm11, %vm331_vm13 }
  0x9c   :  { %v916_v29 = vpop.eup %710  ;;  %v328_v30 = vsub.f32 1.5, %v327_v22  ;;  %472 = vst.msk [vmem:[%s1384_s3] sm:$0xff] %vm471_vm0, %v455_v24  ;;  %v182_v32 = vpop.xlane.xlu1 %181  ;;  %v943_v38 = vmax.f32 %v185_v28, 1e-12  ;;  %vm312_vm3 = vmor %vm310_vm1, %vm311_vm14  ;;  %vm380_vm4 = vweird.f32 %v870_v0  ;;  %vm370_vm6 = vweird.f32 %v908_v21 }
  0x9d   :  { %v179_v33 = vpop.xlane.xlu0 %178  ;;  %v349_v34 = vmul.f32 %v868_v62, %v348_v26  ;;  %v308_v35 = vsub.f32 1.5, %v307_v27  ;;  %v375_v36 = vmul.f32 %v916_v29, %v870_v0  ;;  %476 = vst.msk [vmem:[%s1384_s3 + $0x20] sm:$0xff] %vm471_vm0, %v459_v31  ;;  %v945_v39 = vmax.f32 %v182_v32, 1e-12 }
  0x9e   :  { %v329_v37 = vmul.f32 %v872_v3, %v328_v30  ;;  %v954_v43 = vmax.f32 %v179_v33, 1e-12  ;;  %716 = vrsqrt.f32 %v943_v38  ;;  %v961_v46 = vpop.eup %712  ;;  %vm381_vm5 = vweird.f32 %v916_v29 }
  0x9f   :  { %v353_v40 = vsel %vm352_vm15, %v868_v62, %v349_v34  ;;  %v309_v41 = vmul.f32 %v877_v7, %v308_v35  ;;  %v376_v42 = vmul.f32 %v916_v29, %v375_v36  ;;  %718 = vrsqrt.f32 %v945_v39  ;;  %vm382_vm8 = vmor %vm380_vm4, %vm381_vm5 }
  0xa0   :  { %v333_v44 = vsel %vm332_vm2, %v872_v3, %v329_v37  ;;  %v460_v45 = vmul.f32 %v865_v58, %v353_v40  ;;  %v966_v50 = vpop.eup %714  ;;  %v365_v51 = vmul.f32 %v961_v46, %v908_v21  ;;  %720 = vrsqrt.f32 %v954_v43 }
  0xa1   :  { %v313_v47 = vsel %vm312_vm3, %v877_v7, %v309_v41  ;;  %v377_v48 = vmul.f32 0.5, %v376_v42  ;;  %v458_v49 = vmul.f32 %v865_v58, %v333_v44  ;;  %v355_v54 = vmul.f32 %v966_v50, %v910_v23 }
  0xa2   :  { %v456_v52 = vmul.f32 %v865_v58, %v313_v47  ;;  %477 = vst.msk [vmem:[%s1384_s3 + $0x28] sm:$0xff] %vm471_vm0, %v460_v45  ;;  %v366_v56 = vmul.f32 %v961_v46, %v365_v51  ;;  %vm360_vm7 = vweird.f32 %v910_v23  ;;  %vm371_vm9 = vweird.f32 %v961_v46 }
  0xa3   :  { %v378_v53 = vsub.f32 1.5, %v377_v48  ;;  %475 = vst.msk [vmem:[%s1384_s3 + $0x18] sm:$0xff] %vm471_vm0, %v458_v49  ;;  %v194_v55 = vpop.xlane.xlu2 %193  ;;  %v356_v62 = vmul.f32 %v966_v50, %v355_v54  ;;  %vm410_vm10 = vweird.f32 %v943_v38  ;;  %vm400_vm11 = vweird.f32 %v945_v39  ;;  %vm372_vm14 = vmor %vm370_vm6, %vm371_vm9 }
  0xa4   :  { %473 = vst.msk [vmem:[%s1384_s3 + $0x8] sm:$0xff] %vm471_vm0, %v456_v52  ;;  %v990_v57 = vmax.f32 %v194_v55, 1e-12  ;;  %v191_v59 = vpop.xlane.xlu1 %190  ;;  %v997_v1 = vpop.eup %716  ;;  %v367_v2 = vmul.f32 0.5, %v366_v56  ;;  %vm361_vm12 = vweird.f32 %v966_v50  ;;  %vm390_vm13 = vweird.f32 %v954_v43 }
  0xa5   :  { %v188_v60 = vpop.xlane.xlu0 %187  ;;  %v379_v61 = vmul.f32 %v916_v29, %v378_v53  ;;  %v995_v63 = vmax.f32 %v191_v59, 1e-12  ;;  %v1006_v3 = vpop.eup %718  ;;  %v357_v5 = vmul.f32 0.5, %v356_v62  ;;  %v405_v6 = vmul.f32 %v997_v1, %v943_v38  ;;  %vm362_vm1 = vmor %vm360_vm7, %vm361_vm12 }
  0xa6   :  { %722 = vrsqrt.f32 %v990_v57  ;;  %v1011_v7 = vmax.f32 %v188_v60, 1e-12  ;;  %v368_v8 = vsub.f32 1.5, %v367_v2  ;;  %v395_v9 = vmul.f32 %v1006_v3, %v945_v39  ;;  %v1017_v10 = vpop.eup %720 }
  0xa7   :  { %v383_v4 = vsel %vm382_vm8, %v916_v29, %v379_v61  ;;  %v358_v11 = vsub.f32 1.5, %v357_v5  ;;  %v406_v12 = vmul.f32 %v997_v1, %v405_v6  ;;  %724 = vrsqrt.f32 %v995_v63 }
  0xa8   :  { %v463_v0 = vmul.f32 %v865_v58, %v383_v4  ;;  %v369_v13 = vmul.f32 %v961_v46, %v368_v8  ;;  %v396_v14 = vmul.f32 %v1006_v3, %v395_v9  ;;  %v385_v15 = vmul.f32 %v1017_v10, %v954_v43 }
  0xa9   :  { %v359_v16 = vmul.f32 %v966_v50, %v358_v11  ;;  %v407_v17 = vmul.f32 0.5, %v406_v12  ;;  %vm411_vm15 = vweird.f32 %v997_v1  ;;  %726 = vrsqrt.f32 %v1011_v7 }
  0xaa   :  { %480 = vst.msk [vmem:[%s1384_s3 + $0x40] sm:$0xff] %vm471_vm0, %v463_v0  ;;  %v373_v20 = vsel %vm372_vm14, %v961_v46, %v369_v13  ;;  %v397_v22 = vmul.f32 0.5, %v396_v14  ;;  %v386_v21 = vmul.f32 %v1017_v10, %v385_v15  ;;  %vm401_vm2 = vweird.f32 %v1006_v3  ;;  %vm412_vm4 = vmor %vm410_vm10, %vm411_vm15 }
  0xab   :  { %v235_v18 = vpop.xlane.xlu2 %234  ;;  %v363_v27 = vsel %vm362_vm1, %v966_v50, %v359_v16  ;;  %v462_v28 = vmul.f32 %v865_v58, %v373_v20  ;;  %v408_v29 = vsub.f32 1.5, %v407_v17  ;;  %vm440_vm3 = vweird.f32 %v990_v57  ;;  %vm402_vm6 = vmor %vm400_vm11, %vm401_vm2 }
  0xac   :  { %v1038_v19 = vpop.eup %722  ;;  %v1046_v24 = vmax.f32 %v235_v18, 1e-12  ;;  %v232_v25 = vpop.xlane.xlu1 %231  ;;  %v461_v31 = vmul.f32 %v865_v58, %v363_v27  ;;  %v398_v32 = vsub.f32 1.5, %v397_v22  ;;  %v387_v23 = vmul.f32 0.5, %v386_v21 }
  0xad   :  { %v197_v26 = vpop.xlane.xlu0 %196  ;;  %v435_v30 = vmul.f32 %v1038_v19, %v990_v57  ;;  %v1054_v33 = vpop.eup %724  ;;  %479 = vst.msk [vmem:[%s1384_s3 + $0x38] sm:$0xff] %vm471_vm0, %v462_v28  ;;  %v409_v34 = vmul.f32 %v997_v1, %v408_v29  ;;  %vm391_vm5 = vweird.f32 %v1017_v10  ;;  %v1083_v38 = vmax.f32 %v232_v25, 1e-12 }
  0xae   :  { %728 = vrsqrt.f32 %v1046_v24  ;;  %478 = vst.msk [vmem:[%s1384_s3 + $0x30] sm:$0xff] %vm471_vm0, %v461_v31  ;;  %v399_v36 = vmul.f32 %v1006_v3, %v398_v32  ;;  %v388_v37 = vsub.f32 1.5, %v387_v23  ;;  %v425_v40 = vmul.f32 %v1054_v33, %v995_v63  ;;  %vm392_vm7 = vmor %vm390_vm13, %vm391_vm5 }
  0xaf   :  { %v436_v35 = vmul.f32 %v1038_v19, %v435_v30  ;;  %v1076_v41 = vpop.eup %726  ;;  %v413_v42 = vsel %vm412_vm4, %v997_v1, %v409_v34  ;;  %v1085_v45 = vmax.f32 %v197_v26, 1e-12  ;;  %vm441_vm8 = vweird.f32 %v1038_v19 }
  0xb0   :  { %v466_v46 = vmul.f32 %v865_v58, %v413_v42  ;;  %v403_v47 = vsel %vm402_vm6, %v1006_v3, %v399_v36  ;;  %v389_v48 = vmul.f32 %v1017_v10, %v388_v37  ;;  %v426_v49 = vmul.f32 %v1054_v33, %v425_v40  ;;  %vm442_vm9 = vmor %vm440_vm3, %vm441_vm8 }
  0xb1   :  { %v437_v44 = vmul.f32 0.5, %v436_v35  ;;  %v465_v50 = vmul.f32 %v865_v58, %v403_v47  ;;  %v415_v51 = vmul.f32 %v1076_v41, %v1011_v7  ;;  %730 = vrsqrt.f32 %v1083_v38 }
  0xb2   :  { %483 = vst.msk [vmem:[%s1384_s3 + $0x58] sm:$0xff] %vm471_vm0, %v466_v46  ;;  %v393_v53 = vsel %vm392_vm7, %v1017_v10, %v389_v48  ;;  %v427_v54 = vmul.f32 0.5, %v426_v49  ;;  %732 = vrsqrt.f32 %v1085_v45  ;;  %vm430_vm10 = vweird.f32 %v995_v63 }
  0xb3   :  { %v438_v39 = vsub.f32 1.5, %v437_v44  ;;  %v244_v52 = vpop.xlane.xlu2 %243  ;;  %482 = vst.msk [vmem:[%s1384_s3 + $0x50] sm:$0xff] %vm471_vm0, %v465_v50  ;;  %v464_v59 = vmul.f32 %v865_v58, %v393_v53  ;;  %v416_v61 = vmul.f32 %v1076_v41, %v415_v51  ;;  %vm431_vm11 = vweird.f32 %v1054_v33 }
  0xb4   :  { %v241_v55 = vpop.xlane.xlu1 %240  ;;  %v1103_v56 = vpop.eup %728  ;;  %v428_v62 = vsub.f32 1.5, %v427_v54  ;;  %v1126_v4 = vmax.f32 %v244_v52, 1e-12  ;;  %vm432_vm12 = vmor %vm430_vm10, %vm431_vm11  ;;  %vm421_vm13 = vweird.f32 %v1076_v41  ;;  %vm420_vm14 = vweird.f32 %v1011_v7 }
  0xb5   :  { %v238_v43 = vpop.xlane.xlu0 %237  ;;  %v439_v60 = vmul.f32 %v1038_v19, %v438_v39  ;;  %v515_v1 = vmul.f32 %v1103_v56, %v1046_v24  ;;  %481 = vst.msk [vmem:[%s1384_s3 + $0x48] sm:$0xff] %vm471_vm0, %v464_v59  ;;  %v417_v3 = vmul.f32 0.5, %v416_v61  ;;  %v1128_v57 = vmax.f32 %v241_v55, 1e-12  ;;  %vm422_vm1 = vmor %vm420_vm14, %vm421_vm13 }
  0xb6   :  { %v429_v63 = vmul.f32 %v1054_v33, %v428_v62  ;;  %v1133_v8 = vmax.f32 %v238_v43, 1e-12  ;;  %734 = vrsqrt.f32 %v1126_v4  ;;  %vm520_vm15 = vweird.f32 %v1046_v24 }
  0xb7   :  { %v443_v2 = vsel %vm442_vm9, %v1038_v19, %v439_v60  ;;  %v516_v6 = vmul.f32 %v1103_v56, %v515_v1  ;;  %v418_v0 = vsub.f32 1.5, %v417_v3  ;;  %v1137_v9 = vpop.eup %730  ;;  %736 = vrsqrt.f32 %v1128_v57 }
  0xb8   :  { %v469_v5 = vmul.f32 %v865_v58, %v443_v2  ;;  %v433_v10 = vsel %vm432_vm12, %v1054_v33, %v429_v63  ;;  %v1146_v12 = vpop.eup %732  ;;  %v505_v15 = vmul.f32 %v1137_v9, %v1083_v38  ;;  %vm521_vm2 = vweird.f32 %v1103_v56 }
  0xb9   :  { %v517_v11 = vmul.f32 0.5, %v516_v6  ;;  %v468_v13 = vmul.f32 %v865_v58, %v433_v10  ;;  %v419_v14 = vmul.f32 %v1076_v41, %v418_v0  ;;  %v445_v7 = vmul.f32 %v1146_v12, %v1085_v45  ;;  %vm522_vm3 = vmor %vm520_vm15, %vm521_vm2 }
  0xba   :  { %486 = vst.msk [vmem:[%s1384_s3 + $0x70] sm:$0xff] %vm471_vm0, %v469_v5  ;;  %738 = vrsqrt.f32 %v1133_v8  ;;  %v506_v22 = vmul.f32 %v1137_v9, %v505_v15  ;;  %vm510_vm4 = vweird.f32 %v1083_v38  ;;  %vm450_vm5 = vweird.f32 %v1085_v45 }
  0xbb   :  { %v253_v16 = vpop.xlane.xlu2 %252  ;;  %v518_v17 = vsub.f32 1.5, %v517_v11  ;;  %485 = vst.msk [vmem:[%s1384_s3 + $0x68] sm:$0xff] %vm471_vm0, %v468_v13  ;;  %v423_v20 = vsel %vm422_vm1, %v1076_v41, %v419_v14  ;;  %v446_v28 = vmul.f32 %v1146_v12, %v445_v7  ;;  %vm550_vm6 = vweird.f32 %v1126_v4 }
  0xbc   :  { %v250_v18 = vpop.xlane.xlu1 %249  ;;  %v1163_v21 = vmax.f32 %v253_v16, 1e-12  ;;  %v467_v26 = vmul.f32 %v865_v58, %v423_v20  ;;  %v1172_v30 = vpop.eup %734  ;;  %v507_v31 = vmul.f32 0.5, %v506_v22  ;;  %vm511_vm7 = vweird.f32 %v1137_v9 }
  0xbd   :  { %v247_v19 = vpop.xlane.xlu0 %246  ;;  %v1165_v25 = vmax.f32 %v250_v18, 1e-12  ;;  %v519_v27 = vmul.f32 %v1103_v56, %v518_v17  ;;  %v1181_v32 = vpop.eup %736  ;;  %v447_v33 = vmul.f32 0.5, %v446_v28  ;;  %v545_v24 = vmul.f32 %v1172_v30, %v1126_v4  ;;  %vm512_vm10 = vmor %vm510_vm4, %vm511_vm7 }
  0xbe   :  { %v1170_v29 = vmax.f32 %v247_v19, 1e-12  ;;  %740 = vrsqrt.f32 %v1163_v21  ;;  %484 = vst.msk [vmem:[%s1384_s3 + $0x60] sm:$0xff] %vm471_vm0, %v467_v26  ;;  %v508_v34 = vsub.f32 1.5, %v507_v31  ;;  %v535_v35 = vmul.f32 %v1181_v32, %v1128_v57 }
  0xbf   :  { %v523_v23 = vsel %vm522_vm3, %v1103_v56, %v519_v27  ;;  %742 = vrsqrt.f32 %v1165_v25  ;;  %v448_v37 = vsub.f32 1.5, %v447_v33  ;;  %vm451_vm8 = vweird.f32 %v1146_v12 }
  0xc0   :  { %665 = vst.msk [vmem:[%s1385_s4 + $0x8] sm:$0xff] %vm471_vm0, %v523_v23  ;;  %v1199_v36 = vpop.eup %738  ;;  %v546_v40 = vmul.f32 %v1172_v30, %v545_v24  ;;  %744 = vrsqrt.f32 %v1170_v29  ;;  %v509_v41 = vmul.f32 %v1137_v9, %v508_v34  ;;  %v536_v42 = vmul.f32 %v1181_v32, %v535_v35  ;;  %vm452_vm12 = vmor %vm450_vm5, %vm451_vm8 }
  0xc1   :  { %vm540_vm9 = vweird.f32 %v1128_v57  ;;  %v525_v44 = vmul.f32 %v1199_v36, %v1133_v8  ;;  %v449_v47 = vmul.f32 %v1146_v12, %v448_v37  ;;  %vm551_vm11 = vweird.f32 %v1172_v30 }
  0xc2   :  { %v547_v48 = vmul.f32 0.5, %v546_v40  ;;  %v513_v52 = vsel %vm512_vm10, %v1137_v9, %v509_v41  ;;  %v537_v38 = vmul.f32 0.5, %v536_v42  ;;  %vm541_vm13 = vweird.f32 %v1181_v32  ;;  %vm552_vm15 = vmor %vm550_vm6, %vm551_vm11 }
  0xc3   :  { %v262_v46 = vpop.xlane.xlu2 %261  ;;  %v526_v53 = vmul.f32 %v1199_v36, %v525_v44  ;;  %664 = vst.msk [vmem:[%s1385_s4] sm:$0xff] %vm471_vm0, %v513_v52  ;;  %v453_v54 = vsel %vm452_vm12, %v1146_v12, %v449_v47  ;;  %vm530_vm14 = vweird.f32 %v1133_v8  ;;  %vm531_vm1 = vweird.f32 %v1199_v36  ;;  %vm542_vm2 = vmor %vm540_vm9, %vm541_vm13 }
  0xc4   :  { %v1213_v49 = vmax.f32 %v262_v46, 1e-12  ;;  %v259_v50 = vpop.xlane.xlu1 %258  ;;  %v1215_v51 = vpop.eup %740  ;;  %v548_v55 = vsub.f32 1.5, %v547_v48  ;;  %v470_v59 = vmul.f32 %v865_v58, %v453_v54  ;;  %v538_v60 = vsub.f32 1.5, %v537_v38  ;;  %vm532_vm4 = vmor %vm530_vm14, %vm531_vm1 }
  0xc5   :  { %v256_v39 = vpop.xlane.xlu0 %255  ;;  %v575_v43 = vmul.f32 %v1215_v51, %v1163_v21  ;;  %v1231_v56 = vmax.f32 %v259_v50, 1e-12  ;;  %v1233_v45 = vpop.eup %742  ;;  %v527_v61 = vmul.f32 0.5, %v526_v53  ;;  %vm580_vm3 = vweird.f32 %v1163_v21 }
  0xc6   :  { %746 = vrsqrt.f32 %v1213_v49  ;;  %v1237_v62 = vpop.eup %744  ;;  %v549_v1 = vmul.f32 %v1172_v30, %v548_v55  ;;  %v565_v3 = vmul.f32 %v1233_v45, %v1165_v25  ;;  %487 = vst.msk [vmem:[%s1384_s3 + $0x78] sm:$0xff] %vm471_vm0, %v470_v59  ;;  %v539_v58 = vmul.f32 %v1181_v32, %v538_v60 }
  0xc7   :  { %v576_v2 = vmul.f32 %v1215_v51, %v575_v43  ;;  %v528_v5 = vsub.f32 1.5, %v527_v61  ;;  %v555_v63 = vmul.f32 %v1237_v62, %v1170_v29  ;;  %748 = vrsqrt.f32 %v1231_v56 }
  0xc8   :  { %v553_v6 = vsel %vm552_vm15, %v1172_v30, %v549_v1  ;;  %v566_v4 = vmul.f32 %v1233_v45, %v565_v3  ;;  %v543_v9 = vsel %vm542_vm2, %v1181_v32, %v539_v58  ;;  %vm581_vm5 = vweird.f32 %v1215_v51 }
  0xc9   :  { %v577_v0 = vmul.f32 0.5, %v576_v2  ;;  %668 = vst.msk [vmem:[%s1385_s4 + $0x20] sm:$0xff] %vm471_vm0, %v553_v6  ;;  %v529_v10 = vmul.f32 %v1199_v36, %v528_v5  ;;  %v556_v11 = vmul.f32 %v1237_v62, %v555_v63  ;;  %v1278_v14 = vmax.f32 %v256_v39, 1e-12  ;;  %vm582_vm7 = vmor %vm580_vm3, %vm581_vm5 }
  0xca   :  { %667 = vst.msk [vmem:[%s1385_s4 + $0x18] sm:$0xff] %vm471_vm0, %v543_v9  ;;  %v567_v13 = vmul.f32 0.5, %v566_v4  ;;  %vm571_vm6 = vweird.f32 %v1233_v45  ;;  %vm570_vm8 = vweird.f32 %v1165_v25  ;;  %vm561_vm9 = vweird.f32 %v1237_v62 }
  0xcb   :  { %v271_v57 = vpop.xlane.xlu2 %270  ;;  %v578_v12 = vsub.f32 1.5, %v577_v0  ;;  %v533_v7 = vsel %vm532_vm4, %v1199_v36, %v529_v10  ;;  %v557_v18 = vmul.f32 0.5, %v556_v11  ;;  %750 = vrsqrt.f32 %v1278_v14  ;;  %vm572_vm10 = vmor %vm570_vm8, %vm571_vm6 }
  0xcc   :  { %v268_v15 = vpop.xlane.xlu1 %267  ;;  %v747_v17 = vpop.eup %746  ;;  %v1281_v19 = vmax.f32 %v271_v57, 1e-12  ;;  %666 = vst.msk [vmem:[%s1385_s4 + $0x10] sm:$0xff] %vm471_vm0, %v533_v7  ;;  %v568_v22 = vsub.f32 1.5, %v567_v13  ;;  %vm560_vm11 = vweird.f32 %v1170_v29  ;;  %vm610_vm13 = vweird.f32 %v1213_v49 }
  0xcd   :  { %v265_v16 = vpop.xlane.xlu0 %264  ;;  %v1283_v20 = vmax.f32 %v268_v15, 1e-12  ;;  %v579_v8 = vmul.f32 %v1215_v51, %v578_v12  ;;  %v605_v26 = vmul.f32 %v747_v17, %v1213_v49  ;;  %v558_v27 = vsub.f32 1.5, %v557_v18  ;;  %v749_v32 = vpop.eup %748  ;;  %vm562_vm12 = vmor %vm560_vm11, %vm561_vm9 }
  0xce   :  { %v569_v30 = vmul.f32 %v1233_v45, %v568_v22  ;;  %752 = vrsqrt.f32 %v1281_v19  ;;  %v1309_v25 = vmax.f32 %v265_v16, 1e-12  ;;  %v595_v24 = vmul.f32 %v749_v32, %v1231_v56 }
  0xcf   :  { %v583_v28 = vsel %vm582_vm7, %v1215_v51, %v579_v8  ;;  %v606_v31 = vmul.f32 %v747_v17, %v605_v26  ;;  %v559_v21 = vmul.f32 %v1237_v62, %v558_v27  ;;  %754 = vrsqrt.f32 %v1283_v20 }
  0xd0   :  { %671 = vst.msk [vmem:[%s1385_s4 + $0x38] sm:$0xff] %vm471_vm0, %v583_v28  ;;  %v573_v23 = vsel %vm572_vm10, %v1233_v45, %v569_v30  ;;  %756 = vrsqrt.f32 %v1309_v25  ;;  %vm611_vm14 = vweird.f32 %v747_v17  ;;  %v596_v35 = vmul.f32 %v749_v32, %v595_v24 }
  0xd1   :  { %v607_v33 = vmul.f32 0.5, %v606_v31  ;;  %670 = vst.msk [vmem:[%s1385_s4 + $0x30] sm:$0xff] %vm471_vm0, %v573_v23  ;;  %v563_v34 = vsel %vm562_vm12, %v1237_v62, %v559_v21  ;;  %v751_v40 = vpop.eup %750  ;;  %vm612_vm15 = vmor %vm610_vm13, %vm611_vm14  ;;  %vm601_vm1 = vweird.f32 %v749_v32  ;;  %vm600_vm2 = vweird.f32 %v1231_v56 }
  0xd2   :  { %669 = vst.msk [vmem:[%s1385_s4 + $0x28] sm:$0xff] %vm471_vm0, %v563_v34  ;;  %v597_v47 = vmul.f32 0.5, %v596_v35  ;;  %v585_v48 = vmul.f32 %v751_v40, %v1278_v14  ;;  %vm602_vm3 = vmor %vm600_vm2, %vm601_vm1  ;;  %vm590_vm4 = vweird.f32 %v1278_v14  ;;  %vm591_vm5 = vweird.f32 %v751_v40 }
  0xd3   :  { %v608_v29 = vsub.f32 1.5, %v607_v33  ;;  %vm640_vm6 = vweird.f32 %v1281_v19  ;;  %vm592_vm9 = vmor %vm590_vm4, %vm591_vm5  ;;  %vm630_vm10 = vweird.f32 %v1283_v20  ;;  %vm620_vm14 = vweird.f32 %v1309_v25 }
  0xd4   :  { %v277_v36 = vpop.xlane.xlu1 %276  ;;  %v753_v44 = vpop.eup %752  ;;  %v598_v51 = vsub.f32 1.5, %v597_v47  ;;  %v586_v52 = vmul.f32 %v751_v40, %v585_v48 }
  0xd5   :  { %v274_v37 = vpop.xlane.xlu0 %273  ;;  %v1324_v41 = vmax.f32 %v277_v36, 1e-12  ;;  %v609_v46 = vmul.f32 %v747_v17, %v608_v29  ;;  %v755_v50 = vpop.eup %754  ;;  %v635_v39 = vmul.f32 %v753_v44, %v1281_v19  ;;  %vm641_vm7 = vweird.f32 %v753_v44 }
  0xd6   :  { %v1326_v42 = vmax.f32 %v274_v37, 1e-12  ;;  %v625_v38 = vmul.f32 %v755_v50, %v1283_v20  ;;  %v757_v53 = vpop.eup %756  ;;  %v599_v55 = vmul.f32 %v749_v32, %v598_v51  ;;  %v587_v43 = vmul.f32 0.5, %v586_v52  ;;  %vm642_vm12 = vmor %vm640_vm6, %vm641_vm7 }
  0xd7   :  { %758 = vrsqrt.f32 %v1324_v41  ;;  %v613_v49 = vsel %vm612_vm15, %v747_v17, %v609_v46  ;;  %v636_v54 = vmul.f32 %v753_v44, %v635_v39  ;;  %v615_v59 = vmul.f32 %v757_v53, %v1309_v25 }
  0xd8   :  { %674 = vst.msk [vmem:[%s1385_s4 + $0x50] sm:$0xff] %vm471_vm0, %v613_v49  ;;  %760 = vrsqrt.f32 %v1326_v42  ;;  %v626_v45 = vmul.f32 %v755_v50, %v625_v38  ;;  %v603_v61 = vsel %vm602_vm3, %v749_v32, %v599_v55  ;;  %v588_v62 = vsub.f32 1.5, %v587_v43 }
  0xd9   :  { %v637_v60 = vmul.f32 0.5, %v636_v54  ;;  %v616_v2 = vmul.f32 %v757_v53, %v615_v59  ;;  %673 = vst.msk [vmem:[%s1385_s4 + $0x48] sm:$0xff] %vm471_vm0, %v603_v61  ;;  %vm631_vm8 = vweird.f32 %v755_v50  ;;  %vm621_vm11 = vweird.f32 %v757_v53 }
  0xda   :  { %v627_v1 = vmul.f32 0.5, %v626_v45  ;;  %v589_v58 = vmul.f32 %v751_v40, %v588_v62  ;;  %vm632_vm13 = vmor %vm630_vm10, %vm631_vm8  ;;  %vm660_vm2 = vweird.f32 %v1324_v41  ;;  %vm650_vm5 = vweird.f32 %v1326_v42 }
  0xdb   :  { %v638_v56 = vsub.f32 1.5, %v637_v60  ;;  %v617_v63 = vmul.f32 0.5, %v616_v2  ;;  %vm622_vm15 = vmor %vm620_vm14, %vm621_vm11 }
  0xdc   :  { %v628_v5 = vsub.f32 1.5, %v627_v1  ;;  %v593_v9 = vsel %vm592_vm9, %v751_v40, %v589_v58 }
  0xdd   :  { %v759_v3 = vpop.eup %758  ;;  %v639_v4 = vmul.f32 %v753_v44, %v638_v56  ;;  %v618_v11 = vsub.f32 1.5, %v617_v63  ;;  %672 = vst.msk [vmem:[%s1385_s4 + $0x40] sm:$0xff] %vm471_vm0, %v593_v9 }
  0xde   :  { %v655_v6 = vmul.f32 %v759_v3, %v1324_v41  ;;  %v761_v0 = vpop.eup %760  ;;  %v629_v10 = vmul.f32 %v755_v50, %v628_v5  ;;  %vm661_vm1 = vweird.f32 %v759_v3 }
  0xdf   :  { %v643_v12 = vsel %vm642_vm12, %v753_v44, %v639_v4  ;;  %v645_v13 = vmul.f32 %v761_v0, %v1326_v42  ;;  %v619_v15 = vmul.f32 %v757_v53, %v618_v11  ;;  %vm662_vm3 = vmor %vm660_vm2, %vm661_vm1  ;;  %vm651_vm4 = vweird.f32 %v761_v0 }
  0xe0   :  { %v656_v57 = vmul.f32 %v759_v3, %v655_v6  ;;  %677 = vst.msk [vmem:[%s1385_s4 + $0x68] sm:$0xff] %vm471_vm0, %v643_v12  ;;  %v633_v14 = vsel %vm632_vm13, %v755_v50, %v629_v10  ;;  %vm652_vm6 = vmor %vm650_vm5, %vm651_vm4 }
  0xe1   :  { %676 = vst.msk [vmem:[%s1385_s4 + $0x60] sm:$0xff] %vm471_vm0, %v633_v14  ;;  %v646_v17 = vmul.f32 %v761_v0, %v645_v13  ;;  %v623_v7 = vsel %vm622_vm15, %v757_v53, %v619_v15 }
  0xe2   :  { %v657_v16 = vmul.f32 0.5, %v656_v57  ;;  %675 = vst.msk [vmem:[%s1385_s4 + $0x58] sm:$0xff] %vm471_vm0, %v623_v7 }
  0xe3   :  { %v647_v19 = vmul.f32 0.5, %v646_v17 }
  0xe4   :  { %v658_v18 = vsub.f32 1.5, %v657_v16 }
  0xe5   :  { %v648_v8 = vsub.f32 1.5, %v647_v19 }
  0xe6   :  { %v659_v20 = vmul.f32 %v759_v3, %v658_v18 }
  0xe7   :  { %v649_v26 = vmul.f32 %v761_v0, %v648_v8 }
  0xe8   :  { %v663_v22 = vsel %vm662_vm3, %v759_v3, %v659_v20 }
  0xe9   :  { %679 = vst.msk [vmem:[%s1385_s4 + $0x78] sm:$0xff] %vm471_vm0, %v663_v22  ;;  %v653_v27 = vsel %vm652_vm6, %v761_v0, %v649_v26 }
  0xea   :  { %678 = vst.msk [vmem:[%s1385_s4 + $0x70] sm:$0xff] %vm471_vm0, %v653_v27 }
  0xeb   :  { %688 = vsyncpa [#allocation4], 1 }
  0xec   :  { %689 = vsyncpa [#allocation6], 1 }

</bundles_post_ra>
